<compile_context>
chip_gen: v6e
topology: v6e:2x2x1
jax: 0.10.0
libtpu: 0.0.40
codegen_flags: <defaults>
</compile_context>

<pallas_src>
import math
from functools import partial

import jax
import jax.numpy as jnp
from jax.experimental import pallas as pl
from jax.experimental.pallas import tpu as pltpu


# --------------------------------------------------------------------------
# Pallas kernel: per-(B,T)-row normalization over H + style application.
# Block views: x_ref/o_ref (1, tT, H); mu_mix_ref/sig_mix_ref (1, 1, H).
# --------------------------------------------------------------------------
def _mixstyle_kernel(x_ref, mu_mix_ref, sig_mix_ref, o_ref, *, eps):
    x = x_ref[0].astype(jnp.float32)                 # (tT, H)
    H = x.shape[-1]

    # Two-pass row statistics over the lane axis (XLU reductions).
    mu = jnp.sum(x, axis=-1, keepdims=True) * jnp.float32(1.0 / H)   # (tT, 1)
    xc = x - mu                                                       # needed for output
    # torch.std default is unbiased -> divide by (H - 1)
    var = jnp.sum(xc * xc, axis=-1, keepdims=True) * jnp.float32(1.0 / (H - 1))
    sig = jnp.sqrt(var)

    # Exact reciprocal on the tiny (tT, 1) column (approx EUP rcp was the
    # previous correctness failure), then a broadcast multiply.
    inv = jnp.float32(1.0) / (sig + jnp.float32(eps))                 # (tT, 1)

    mu_mix = mu_mix_ref[0]                           # (1, H)
    sig_mix = sig_mix_ref[0]                         # (1, H)
    o_ref[0] = ((xc * inv) * sig_mix + mu_mix).astype(o_ref.dtype)


# --------------------------------------------------------------------------
# Tiling helper: largest T-tile <= max_tile that divides T and is a multiple
# of 8 (sublane size); falls back to a full-T block (always legal).
# --------------------------------------------------------------------------
def _choose_t_tile(T, max_tile=512):
    if T <= max_tile:
        return T
    t = (max_tile // 8) * 8
    while t >= 8:
        if T % t == 0:
            return t
        t -= 8
    return T


def _mixstyle_core(x, mu_mix, sig_mix, *, eps):
    B, T, H = x.shape
    tT = _choose_t_tile(T)
    grid = (B, T // tT)
    kernel = partial(_mixstyle_kernel, eps=eps)
    return pl.pallas_call(
        kernel,
        out_shape=jax.ShapeDtypeStruct((B, T, H), x.dtype),
        grid=grid,
        in_specs=[
            pl.BlockSpec((1, tT, H), lambda b, t: (b, t, 0)),   # x tile
            pl.BlockSpec((1, 1, H), lambda b, t: (b, 0, 0)),    # mu_mix (T-resident)
            pl.BlockSpec((1, 1, H), lambda b, t: (b, 0, 0)),    # sig_mix (T-resident)
        ],
        out_specs=pl.BlockSpec((1, tT, H), lambda b, t: (b, t, 0)),
        compiler_params=pltpu.CompilerParams(
            dimension_semantics=("parallel", "parallel")),
    )(x, mu_mix, sig_mix)


# --------------------------------------------------------------------------
# Jittable forward (no host syncs): affine + mixing in XLA, heavy work in
# the Pallas kernel.  lmda is (B,), perm is (B,) int.
# --------------------------------------------------------------------------
@partial(jax.jit, static_argnames=("eps", "is_inference"))
def mixstyle_forward(x, spk_embed, weight, bias, lmda, perm, *,
                     eps=1e-6, is_inference=False):
    B, T, H = x.shape
    # Tiny affine layer (LinearNorm): (B, H) @ (H, 2H) + bias, then split.
    aff = (spk_embed.reshape(B, H).astype(jnp.float32)
           @ weight.T.astype(jnp.float32)
           + bias.astype(jnp.float32))
    mu1, sig1 = aff[:, :H], aff[:, H:]

    if is_inference:
        mu_mix, sig_mix = mu1, sig1
    else:
        lm = lmda.reshape(B, 1).astype(jnp.float32)
        mu_mix = mu1 * lm + mu1[perm] * (1.0 - lm)
        sig_mix = sig1 * lm + sig1[perm] * (1.0 - lm)

    return _mixstyle_core(x,
                          mu_mix.reshape(B, 1, H),
                          sig_mix.reshape(B, 1, H),
                          eps=eps)


# --------------------------------------------------------------------------
# Convenience wrapper reproducing the full module semantics, including the
# probabilistic gate.  The gate stays OUTSIDE jit (it is a Python branch that
# returns x untouched, matching `if random.random() > self.p: return x`).
# --------------------------------------------------------------------------
def mixstyle(x, spk_embed, weight, bias, *, key, p=0.5, alpha=0.1, eps=1e-6,
             is_inference=False, force_apply=False):
    B = x.shape[0]
    k_gate, k_beta, k_perm = jax.random.split(key, 3)
    if (not is_inference) and (not force_apply):
        if float(jax.random.uniform(k_gate)) > p:   # host-side gate, non-jitted
            return x
    lmda = jax.random.beta(k_beta, alpha, alpha, (B,)).astype(jnp.float32)
    perm = jax.random.permutation(k_perm, B)
    return mixstyle_forward(x, spk_embed, weight, bias, lmda, perm,
                            eps=eps, is_inference=is_inference)


# --------------------------------------------------------------------------
# Deterministic parameter init (LinearNorm: xavier_uniform, gain=1; torch
# Linear default bias init).
# --------------------------------------------------------------------------
def init_mixstyle_params(key, hidden_size):
    k_w, k_b = jax.random.split(key)
    fan_in, fan_out = hidden_size, 2 * hidden_size
    bound_w = math.sqrt(6.0 / (fan_in + fan_out))
    weight = jax.random.uniform(k_w, (fan_out, fan_in), jnp.float32,
                                minval=-bound_w, maxval=bound_w)
    bound_b = 1.0 / math.sqrt(fan_in)
    bias = jax.random.uniform(k_b, (fan_out,), jnp.float32,
                              minval=-bound_b, maxval=bound_b)
    return weight, bias


# --------------------------------------------------------------------------
# Pure-JAX reference (mirrors the PyTorch module) for sanity checking.
# --------------------------------------------------------------------------
def _ref_mixstyle(x, spk_embed, weight, bias, lmda, perm, eps, is_inference):
    B, T, H = x.shape
    mu = jnp.mean(x, axis=-1, keepdims=True)
    sig = jnp.std(x, axis=-1, keepdims=True, ddof=1)
    xn = (x - mu) / (sig + eps)
    aff = spk_embed.reshape(B, H) @ weight.T + bias
    mu1, sig1 = aff[:, :H].reshape(B, 1, H), aff[:, H:].reshape(B, 1, H)
    if is_inference:
        mu_mix, sig_mix = mu1, sig1
    else:
        lm = lmda.reshape(B, 1, 1)
        mu2, sig2 = mu1[perm], sig1[perm]
        mu_mix = mu1 * lm + mu2 * (1.0 - lm)
        sig_mix = sig1 * lm + sig2 * (1.0 - lm)
    return sig_mix * xn + mu_mix


if __name__ == "__main__":
    # H = 256 is the module's default hidden_size and is lane-dense (256 % 128 == 0).
    B, T, H = 2, 16, 256
    p, alpha, eps = 0.5, 0.1, 1e-6

    root = jax.random.PRNGKey(0)
    k_param, k_x, k_spk, k_beta, k_perm = jax.random.split(root, 5)

    weight, bias = init_mixstyle_params(k_param, H)
    x = jax.random.normal(k_x, (B, T, H), jnp.float32)
    spk_embed = jax.random.normal(k_spk, (B, 1, H), jnp.float32)

    lmda = jax.random.beta(k_beta, alpha, alpha, (B,)).astype(jnp.float32)
    perm = jax.random.permutation(k_perm, B)

    # Training path (mixing with permuted batch stats).
    out = mixstyle_forward(x, spk_embed, weight, bias, lmda, perm,
                           eps=eps, is_inference=False)
    out = jax.block_until_ready(out)
    ref = _ref_mixstyle(x, spk_embed, weight, bias, lmda, perm, eps, False)
    assert out.shape == (B, T, H) and out.dtype == jnp.float32
    assert jnp.allclose(out, ref, atol=2e-3, rtol=2e-3), \
        float(jnp.max(jnp.abs(out - ref)))

    # Inference path (mu_mix = mu1, sig_mix = sig1).
    out_inf = mixstyle_forward(x, spk_embed, weight, bias, lmda, perm,
                               eps=eps, is_inference=True)
    out_inf = jax.block_until_ready(out_inf)
    ref_inf = _ref_mixstyle(x, spk_embed, weight, bias, lmda, perm, eps, True)
    assert jnp.allclose(out_inf, ref_inf, atol=2e-3, rtol=2e-3)

    # Convenience wrapper with the (forced) host-side gate.
    out2 = mixstyle(x, spk_embed, weight, bias, key=root, p=p, alpha=alpha,
                    eps=eps, is_inference=False, force_apply=True)
    jax.block_until_ready(out2)
    assert out2.shape == (B, T, H)

    print("KERNEL_OK")
</pallas_src>

<mosaic_0001>
module attributes {stable_mosaic.version = 11 : i64} {
  func.func @_mixstyle_kernel(%arg0: i32, %arg1: i32, %arg2: memref<1x16x256xf32, #tpu.memory_space<vmem>>, %arg3: memref<1x1x256xf32, #tpu.memory_space<vmem>>, %arg4: memref<1x1x256xf32, #tpu.memory_space<vmem>>, %arg5: memref<1x16x256xf32, #tpu.memory_space<vmem>>) attributes {dimension_semantics = [#tpu.dimension_semantics<parallel>, #tpu.dimension_semantics<parallel>], iteration_bounds = array<i64: 2, 1>, scalar_prefetch = 0 : i64, scratch_operands = 0 : i64, tpu.core_type = #tpu.core_type<tc>, window_params = [{transform_indices = @transform_0, window_bounds = array<i64: 1, 16, 256>}, {transform_indices = @transform_1, window_bounds = array<i64: 1, 1, 256>}, {transform_indices = @transform_2, window_bounds = array<i64: 1, 1, 256>}, {transform_indices = @transform_3, window_bounds = array<i64: 1, 16, 256>}]} {
    %c0 = arith.constant 0 : index
    %c0_0 = arith.constant 0 : index
    %c0_1 = arith.constant 0 : index
    %0 = vector.load %arg2[%c0, %c0_0, %c0_1] : memref<1x16x256xf32, #tpu.memory_space<vmem>>, vector<1x16x256xf32>
    %1 = vector.shape_cast %0 : vector<1x16x256xf32> to vector<16x256xf32>
    %cst = arith.constant dense<0.000000e+00> : vector<16xf32>
    %2 = vector.multi_reduction <add>, %1, %cst [1] : vector<16x256xf32> to vector<16xf32>
    %3 = vector.shape_cast %2 : vector<16xf32> to vector<16x1xf32>
    %cst_2 = arith.constant 3.906250e-03 : f32
    %4 = vector.broadcast %cst_2 : f32 to vector<16x1xf32>
    %5 = arith.mulf %3, %4 : vector<16x1xf32>
    %6 = vector.broadcast %5 : vector<16x1xf32> to vector<16x256xf32>
    %7 = arith.subf %1, %6 : vector<16x256xf32>
    %8 = arith.mulf %7, %7 : vector<16x256xf32>
    %cst_3 = arith.constant dense<0.000000e+00> : vector<16xf32>
    %9 = vector.multi_reduction <add>, %8, %cst_3 [1] : vector<16x256xf32> to vector<16xf32>
    %10 = vector.shape_cast %9 : vector<16xf32> to vector<16x1xf32>
    %cst_4 = arith.constant 0.00392156886 : f32
    %11 = vector.broadcast %cst_4 : f32 to vector<16x1xf32>
    %12 = arith.mulf %10, %11 : vector<16x1xf32>
    %13 = math.sqrt %12 : vector<16x1xf32>
    %cst_5 = arith.constant 9.99999997E-7 : f32
    %14 = vector.broadcast %cst_5 : f32 to vector<16x1xf32>
    %15 = arith.addf %13, %14 : vector<16x1xf32>
    %cst_6 = arith.constant 1.000000e+00 : f32
    %16 = vector.broadcast %cst_6 : f32 to vector<16x1xf32>
    %17 = arith.divf %16, %15 : vector<16x1xf32>
    %c0_7 = arith.constant 0 : index
    %c0_8 = arith.constant 0 : index
    %c0_9 = arith.constant 0 : index
    %18 = vector.load %arg3[%c0_7, %c0_8, %c0_9] : memref<1x1x256xf32, #tpu.memory_space<vmem>>, vector<1x1x256xf32>
    %19 = vector.shape_cast %18 : vector<1x1x256xf32> to vector<1x256xf32>
    %c0_10 = arith.constant 0 : index
    %c0_11 = arith.constant 0 : index
    %c0_12 = arith.constant 0 : index
    %20 = vector.load %arg4[%c0_10, %c0_11, %c0_12] : memref<1x1x256xf32, #tpu.memory_space<vmem>>, vector<1x1x256xf32>
    %21 = vector.shape_cast %20 : vector<1x1x256xf32> to vector<1x256xf32>
    %22 = vector.broadcast %17 : vector<16x1xf32> to vector<16x256xf32>
    %23 = arith.mulf %7, %22 : vector<16x256xf32>
    %24 = vector.broadcast %21 : vector<1x256xf32> to vector<16x256xf32>
    %25 = arith.mulf %23, %24 : vector<16x256xf32>
    %26 = vector.broadcast %19 : vector<1x256xf32> to vector<16x256xf32>
    %27 = arith.addf %25, %26 : vector<16x256xf32>
    %c0_13 = arith.constant 0 : index
    %c0_14 = arith.constant 0 : index
    %c0_15 = arith.constant 0 : index
    %28 = vector.load %arg5[%c0_13, %c0_14, %c0_15] : memref<1x16x256xf32, #tpu.memory_space<vmem>>, vector<1x16x256xf32>
    %29 = vector.shape_cast %28 : vector<1x16x256xf32> to vector<16x256xf32>
    %30 = vector.shape_cast %27 : vector<16x256xf32> to vector<1x16x256xf32>
    tpu.vector_store %arg5[%c0_13, %c0_14, %c0_15], %30 {strides = array<i32>} : memref<1x16x256xf32, #tpu.memory_space<vmem>>, vector<1x16x256xf32>,
    return
  }
  func.func @transform_0(%arg0: i32, %arg1: i32) -> (i32, i32, i32) {
    %c0_i32 = arith.constant 0 : i32
    %c0_i32_0 = arith.constant 0 : i32
    return %arg0, %arg1, %c0_i32 : i32, i32, i32
  }
  func.func @transform_1(%arg0: i32, %arg1: i32) -> (i32, i32, i32) {
    %c0_i32 = arith.constant 0 : i32
    %c0_i32_0 = arith.constant 0 : i32
    %c0_i32_1 = arith.constant 0 : i32
    return %arg0, %c0_i32, %c0_i32_0 : i32, i32, i32
  }
  func.func @transform_2(%arg0: i32, %arg1: i32) -> (i32, i32, i32) {
    %c0_i32 = arith.constant 0 : i32
    %c0_i32_0 = arith.constant 0 : i32
    %c0_i32_1 = arith.constant 0 : i32
    return %arg0, %c0_i32, %c0_i32_0 : i32, i32, i32
  }
  func.func @transform_3(%arg0: i32, %arg1: i32) -> (i32, i32, i32) {
    %c0_i32 = arith.constant 0 : i32
    %c0_i32_0 = arith.constant 0 : i32
    return %arg0, %arg1, %c0_i32 : i32, i32, i32
  }
}

</mosaic_0001>

<bundles_post_ra>
// kernel: mixstyle_forward.1
= control target key start
LH: loop header
LB: loop body
LE: loop exit
PB: predicated region body
PF: predicated region fallthrough
CT: control target
= control target key end

     0   :  { %8 = vsyncpa [#allocation3], 0  ;;  %s755_s0 = inlined_call_operand.vmem [shape: f32[2,16,256], index: 0, kind: input, shape index: {}]   ;;  %s756_s1 = inlined_call_operand.vmem [shape: f32[2,1,256], index: 1, kind: input, shape index: {}]   ;;  %s757_s2 = inlined_call_operand.vmem [shape: f32[2,1,256], index: 2, kind: input, shape index: {}]   ;;  %s758_s3 = inlined_call_operand.hbm [shape: f32[2,16,256], index: 3, kind: output, shape index: {}]  }
   0x1   :  { %10 = vsyncpa [#allocation3 + $0x1], 0  ;;  %s631_s12 = smov 0   ;;  %s633_s13 = smov 0  }
   0x2   :  { %s635_s14 = smov 0   ;;  %s637_s15 = smov 0  }
   0x3   :  { %s639_s16 = smov 0   ;;  %s641_s17 = smov 0  }
   0x4 LB: > { %s448_s18 = sadd.s32 4294967295, %s606_s17   ;;  %s449_s19 = sadd.s32 4294967294, %s606_s17   ;;  %s606_s17 = sphi %s641_s17, %s16_s17   ;;  %s602_s16 = sphi %s639_s16, %s765_s16   ;;  %s598_s15 = sphi %s637_s15, %s764_s15   ;;  %s594_s14 = sphi %s635_s14, %s763_s14   ;;  %s590_s13 = sphi %s633_s13, %s762_s13   ;;  %s586_s12 = sphi %s631_s12, %s761_s12  }
   0x5   : > { %s28_s20 = sadd.s32 1, %s602_s16  ;;  %s117_s21 = sadd.s32 1, %s594_s14 }
   0x6   : > { %p30_p0 = scmp.ge.s32.totalorder %s28_s20, 2  ;;  %p127_p1 = scmp.ne.s32.totalorder %s594_s14, %s590_s13 }
   0x7   : > { %p128_p2 = scmp.eq.s32.totalorder %s448_s18, 1  ;;  %p133_p3 = scmp.ne.s32.totalorder %s590_s13, %s586_s12 }
   0x8   : > { %s767_s20 = smov (%p30_p0, %s28_s20), 0  ;;  %p134_p5 = scmp.eq.s32.totalorder %s449_s19, 1 }
   0x9   : > { %p671_p4 = por %p128_p2, %p127_p1  ;;  %s112_s23 = ssub.s32 %s602_s16, %s767_s20 }
   0xa   : > { %p452_p6 = scmp.ge.s32.totalorder %s606_s17, 1  ;;  %p115_p7 = scmp.eq.s32.totalorder %s112_s23, 0 }
   0xb   : > { %p678_p8 = por %p134_p5, %p133_p3  ;;  %p180_p9 = scmp.lt.s32.totalorder %s606_s17, 3 }
   0xc   : > { %s684_s25 = scalar_select %p115_p7, %s594_s14, %s117_s21  }
   0xd   : > { %p181_p10 = pnand %p452_p6, %p180_p9 }
   0xe   : > { %p218_p11 = scmp.lt.s32.totalorder (!%p181_p10), %s598_s15, 1  ;;  %s214_s11 = sand.u32 (!%p181_p10), 1, %s590_s13  }
   0xf   : > { %184 = sbr.rel (%p181_p10) target bundleno = 371 (0x173), region = 32  ;;  %s453_s18 = sshll.u32 (!%p181_p10), %s214_s11, 5 }
  0x10   : > { %s464_s19 = sshll.u32 (!%p181_p10), %s598_s15, 9  ;;  %s216_s21 = scalar_lea.vmem (!%p181_p10), [#allocation2], %s453_s18 }
  0x11   : > { %s342_s23 = sshll.u32 (!%p181_p10), %s216_s21, 4  ;;  %s706_s28 = scalar_lea.hbm (!%p181_p10), %s758_s3, %s464_s19  ;;  %s708_s23 = int_to_ptr.vmem [resolvable:$true] %s342_s23 }
  0x12   : > { %s530_s29 = scalar_lea.vmem (!%p181_p10), %s708_s23, 512 }
  0x13   : > { %p531_p12 = scmp.ne.s32.totalorder (!%p181_p10), %s708_s23, %s530_s29 }
  0x14   : > { %s688_s26 = scalar_select %p218_p11, %s598_s15, 1  ;;  %v292_v33 = vlaneseq }
  0x15   : > { %s710_s15 = scalar_lea.sflag [#allocation3], %s214_s11  ;;  %p532_p13 = pnand %p531_p12, %p671_p4 }
  0x16   : > { %s463_s27 = sshll.u32 %s688_s26, 5  ;;  %s456_s4 = sshll.u32 %s688_s26, 1  ;;  %v293_v37 = vshrl.u32 %v292_v33, 7 }
  0x17   : > { %s226_s30 = scalar_lea.vmem %s755_s0, %s463_s27  ;;  %s235_s7 = scalar_lea.vmem %s757_s2, %s456_s4 }
  0x18   : > { %v237_v0 = vld [vmem:[%s226_s30] sm:$0xff]  ;;  %v238_v1 = vld [vmem:[%s226_s30 + $0x8] sm:$0xff]  ;;  %v239_v3 = vld [vmem:[%s226_s30 + $0x10] sm:$0xff]  ;;  %s231_s10 = scalar_lea.vmem %s756_s1, %s456_s4  ;;  %v294_v38 = vsub.s32 0, %v293_v37  ;;  %v298_v39 = vsub.s32 1, %v293_v37  ;;  %p533_p0 = pneg %p532_p13 }
  0x19   : > { %v241_v2 = vadd.f32 %v238_v1, %v237_v0  ;;  %v240_v4 = vld [vmem:[%s226_s30 + $0x18] sm:$0xff]  ;;  %v286_v40 = vld [vmem:[%s235_s7] sm:$0x3]  ;;  %s608_s30 = smov [#allocation2]  }
  0x1a   : > { %v244_v5 = vadd.f32 %v240_v4, %v239_v3  ;;  %v285_v41 = vld [vmem:[%s231_s10] sm:$0x3]  ;;  %v295_v42 = vrot.slane %v286_v40, %v294_v38  ;;  %v299_v43 = vrot.slane %v286_v40, %v298_v39  ;;  %s534_s4 = sshll.u32 %s608_s30, 4  ;;  %s535_s4 = int_to_ptr.vmem [resolvable:$false] %s534_s4 }
  0x1b   : > { %242 = vadd.xlane.f32.xlu0 %v241_v2  ;;  %v310_v45 = vrot.slane %v285_v41, %v294_v38  ;;  %v314_v46 = vrot.slane %v285_v41, %v298_v39  ;;  %s536_s5 = scalar_lea.vmem %s535_s4, 1024  ;;  %p537_p1 = scmp.lt.s32.totalorder %s708_s23, %s535_s4 }
  0x1c   : > { %p538_p2 = scmp.lt.s32.totalorder %s536_s5, %s530_s29 }
  0x1e   : > { %p539_p3 = por %p538_p2, %p537_p1 }
  0x1f   : > { %245 = vadd.xlane.f32.xlu0 %v244_v5 }
  0x20   : > { %p540_p5 = pnand %p539_p3, %p533_p0 }
  0xa4   : > { %v243_v6 = vpop.xlane.xlu0 %242 }
  0xa5   : > { %v247_v7 = vmul.f32 0.00390625, %v243_v6 }
  0xa7   : > { %v249_v8 = vsub.f32 %v237_v0, %v247_v7  ;;  %v250_v9 = vsub.f32 %v238_v1, %v247_v7 }
  0xa8   : > { %v246_v10 = vpop.xlane.xlu0 %245 }
  0xa9   : > { %v248_v11 = vmul.f32 0.00390625, %v246_v10  ;;  %v253_v12 = vmul.f32 %v249_v8, %v249_v8  ;;  %v254_v13 = vmul.f32 %v250_v9, %v250_v9 }
  0xab   : > { %v251_v14 = vsub.f32 %v239_v3, %v248_v11  ;;  %v252_v15 = vsub.f32 %v240_v4, %v248_v11  ;;  %v257_v16 = vadd.f32 %v254_v13, %v253_v12 }
  0xad   : > { %258 = vadd.xlane.f32.xlu1 %v257_v16  ;;  %v255_v17 = vmul.f32 %v251_v14, %v251_v14  ;;  %v256_v18 = vmul.f32 %v252_v15, %v252_v15 }
  0xaf   : > { %v260_v19 = vadd.f32 %v256_v18, %v255_v17 }
  0xb1   : > { %261 = vadd.xlane.f32.xlu1 %v260_v19 }
 0x136   : > { %v259_v20 = vpop.xlane.xlu1 %258 }
 0x137   : > { %v263_v21 = vmul.f32 0.003921569, %v259_v20 }
 0x139   : > { %522 = vrsqrt.f32 %v263_v21  ;;  %vm267_vm0 = vcmp.eq.f32.partialorder %v263_v21, inf  ;;  %v270_v26 = vand.u32 2147483648, %v263_v21  ;;  %vm269_vm1 = vcmp.eq.f32.partialorder %v263_v21, 0.0 }
 0x13a   : > { %v262_v22 = vpop.xlane.xlu1 %261 }
 0x13b   : > { %v264_v23 = vmul.f32 0.003921569, %v262_v22 }
 0x13d   : > { %524 = vrsqrt.f32 %v264_v23  ;;  %vm274_vm2 = vcmp.eq.f32.partialorder %v264_v23, inf  ;;  %v277_v32 = vand.u32 2147483648, %v264_v23  ;;  %vm276_vm3 = vcmp.eq.f32.partialorder %v264_v23, 0.0 }
 0x146   : > { %v523_v24 = vpop.eup %522 }
 0x147   : > { %v266_v25 = vmul.f32 %v523_v24, %v263_v21 }
 0x149   : > { %v268_v27 = vsel %vm267_vm0, %v263_v21, %v266_v25 }
 0x14a   : > { %v525_v28 = vpop.eup %524  ;;  %v271_v29 = vsel %vm269_vm1, %v270_v26, %v268_v27 }
 0x14b   : > { %v279_v30 = vadd.f32 1e-06, %v271_v29  ;;  %v273_v31 = vmul.f32 %v525_v28, %v264_v23 }
 0x14d   : > { %526 = vrcp.f32 %v279_v30  ;;  %v275_v34 = vsel %vm274_vm2, %v264_v23, %v273_v31 }
 0x14e   : > { %v278_v35 = vsel %vm276_vm3, %v277_v32, %v275_v34 }
 0x14f   : > { %v280_v36 = vadd.f32 1e-06, %v278_v35 }
 0x151   : > { %528 = vrcp.f32 %v280_v36 }
 0x15a   : > { %v527_v44 = vpop.eup %526 }
 0x15b   : > { %v287_v47 = vmul.f32 %v527_v44, %v249_v8  ;;  %v288_v48 = vmul.f32 %v527_v44, %v250_v9 }
 0x15d   : > { %v302_v49 = vmul.f32 %v295_v42, %v287_v47  ;;  %v303_v50 = vmul.f32 %v299_v43, %v288_v48 }
 0x15e   : > { %v529_v51 = vpop.eup %528 }
 0x15f   : > { %v289_v52 = vmul.f32 %v529_v51, %v251_v14  ;;  %v290_v53 = vmul.f32 %v529_v51, %v252_v15  ;;  %v317_v54 = vadd.f32 %v310_v45, %v302_v49  ;;  %v318_v55 = vadd.f32 %v314_v46, %v303_v50 }
 0x161   : > { %v304_v56 = vmul.f32 %v295_v42, %v289_v52  ;;  %v305_v57 = vmul.f32 %v299_v43, %v290_v53  ;;  %321 = vst [vmem:[%s216_s21] sm:$0xff] %v317_v54  ;;  %322 = vst [vmem:[%s216_s21 + $0x8] sm:$0xff] %v318_v55 }
 0x163   : > { %v319_v58 = vadd.f32 %v310_v45, %v304_v56  ;;  %v320_v59 = vadd.f32 %v314_v46, %v305_v57 }
 0x165   : > { %323 = vst [vmem:[%s216_s21 + $0x10] sm:$0xff] %v319_v58  ;;  %324 = vst [vmem:[%s216_s21 + $0x18] sm:$0xff] %v320_v59 }
 0x166   : > { %543 = shalt.err (!%p540_p5)
}
 0x167   : > { %s544_s6 = scalar_lea.hbm %s706_s28, 512  ;;  %s548_s9 = scalar_lea.hbm %s758_s3, 1024 }
 0x168   : > { %p545_p6 = scmp.ne.s32.totalorder %s706_s28, %s544_s6  ;;  %p549_p10 = scmp.lt.s32.totalorder %s706_s28, %s758_s3 }
 0x169   : > { %p550_p11 = scmp.lt.s32.totalorder %s548_s9, %s544_s6 }
 0x16a   : > { %p546_p7 = pnand %p545_p6, %p671_p4 }
 0x16b   : > { %p551_p12 = por %p550_p11, %p549_p10 }
 0x16c   : > { %p547_p9 = pneg %p546_p7 }
 0x16e   : > { %p552_p13 = pnand %p551_p12, %p547_p9 }
 0x170   : > { %555 = shalt.err (!%p552_p13)
}
 0x171   : > { %s609_s18 = smov 256   ;;  %s610_s19 = smov 16  }
 0x172   : > { %465 = dma.vmem_to_hbm [thread:$0]  (%p671_p4), %s708_s23, 512, %s706_s28, %s710_s15, %s609_s18, %s609_s18, %s610_s19  }
 0x173 PF: > { %p471_p0 = scmp.ge.s32.totalorder %s606_s17, 2  ;;  %s357_s21 = sand.u32 1, %s586_s12  }
 0x174   : > { %s358_s26 = scalar_lea.sflag [#allocation3], %s357_s21 }
 0x175   : > { %p468_p1 = pnand %p471_p0, %p678_p8 }
 0x177   : > { %p469_p2 = pneg %p468_p1 }
 0x179   : > { %581 = dma.done.wait (%p469_p2), %s358_s26, 512  }
 0x17a   : > { %583 = vsyncadd (%p469_p2), %s358_s26, 4294966784  ;;  %s16_s17 = sadd.s32 1, %s606_s17   ;;  %s761_s12 = smov %s590_s13 }
 0x17b   : > { %p13_p3 = scmp.ge.s32.totalorder %s16_s17, 4   ;;  %s762_s13 = smov %s594_s14 }
 0x17c   : > { %s763_s14 = smov %s684_s25  ;;  %s764_s15 = smov %s602_s16 }
 0x17d   : > { %s765_s16 = smov %s767_s20  ;;  %15 = sbr.rel (!%p13_p3) target bundleno = 4 (0x4), region = 73 }
 0x182   :  { %363 = vsyncpa [#allocation3], 1 }
 0x183   :  { %365 = vsyncpa [#allocation3 + $0x1], 1 }

</bundles_post_ra>
